<compile_context>
chip_gen: v7x
topology: tpu7x:2x2x1
jax: 0.10.0
libtpu: 0.0.40
codegen_flags: <defaults>
</compile_context>

<pallas_src>
import functools

import jax
import jax.numpy as jnp
from jax.experimental import pallas as pl
from jax.experimental.pallas import tpu as pltpu


def _meta_faster_kernel(amap_ref, q_ref, s_ref, qo_ref, so_ref, att_ref,
                        *, k_shot, map_l, rep):
    """One grid step = one (batch b, support ns) pair, one row-tile of features.

    amap_ref : (1, 1, K*L, HW)   attention-map slice for (b, ns), HW in lanes
    q_ref    : (1, 1, tr, Lw)    query feature rows for (b, ns)
    s_ref    : (1, 1, tr, Lw)    support feature rows for (ns, b)
    qo_ref   : (1, 1, tr, Lw)    query   * att
    so_ref   : (1, 1, tr, Lw)    support * att
    att_ref  : (1, Lw) f32 VMEM  cached, lane-tiled attention row
    """
    row_tile = pl.program_id(2)

    # ---- attention row: sum over L, softmax over HW, mean over K shots ------
    @pl.when(row_tile == 0)
    def _():
        att = None
        for k in range(k_shot):                                   # K small & static
            mk = amap_ref[0, 0, k * map_l:(k + 1) * map_l, :]     # (L, HW)
            sk = jnp.sum(mk, axis=0, keepdims=True)               # (1, HW) sublane reduce
            mx = jnp.max(sk, axis=-1, keepdims=True)              # (1, 1)
            ek = jnp.exp(sk - mx)                                 # EUP
            pk = ek / jnp.sum(ek, axis=-1, keepdims=True)         # softmax over HW
            att = pk if att is None else att + pk
        att = att * (1.0 / k_shot)                                # (1, HW) mean over K

        # Lane-dense broadcast for packed levels (HW < 128): att_l[l] == att[l % HW],
        # matching the (C*HW/128, 128) feature repacking done in the wrapper.
        if rep > 1:
            att = jnp.concatenate([att] * rep, axis=-1)           # (1, Lw)
        att_ref[...] = att

    att = att_ref[...]                                            # (1, Lw)
    qo_ref[0, 0, :, :] = (q_ref[0, 0, :, :] * att).astype(qo_ref.dtype)
    so_ref[0, 0, :, :] = (s_ref[0, 0, :, :] * att).astype(so_ref.dtype)


def _pick_row_tile(n_rows, lane_width, max_block_bytes=2 * 1024 * 1024):
    """Largest row tile keeping one f32 feature block under `max_block_bytes`."""
    max_rows = max(8, max_block_bytes // (lane_width * 4))
    if n_rows <= max_rows:
        return n_rows
    for d in range(int(max_rows), 7, -1):
        if d % 8 == 0 and n_rows % d == 0:
            return d
    return n_rows


@functools.partial(jax.jit, static_argnames=("k_shot",))
def meta_faster_level(query_feat, support_feat, attention_map, k_shot):
    """query_feat: (B, Ns, C, H, W); support_feat: (Ns, B, C, H, W);
    attention_map: (B, Ns, K, H*W, L)  (sum(-1) then softmax over H*W)."""
    B, Ns, C, H, W = query_feat.shape
    assert support_feat.shape == (Ns, B, C, H, W)
    HW = H * W
    K = int(k_shot)
    amap = attention_map.reshape(B, Ns, K, HW, -1)
    L = amap.shape[-1]

    # Lane-dense packing of the per-(b, ns) (C, HW) slab.
    if HW % 128 == 0:
        rep, lane_w, n_rows = 1, HW, C                        # already dense
    elif 128 % HW == 0 and (C * HW) % 128 == 0:
        rep = 128 // HW
        lane_w = 128
        n_rows = (C * HW) // 128                              # repack to 128 lanes
    else:
        rep, lane_w, n_rows = 1, HW, C                        # fallback (masked stores)

    q2 = query_feat.reshape(B, Ns, n_rows, lane_w)            # layout-preserving (free)
    s2 = support_feat.reshape(Ns, B, n_rows, lane_w)          # layout-preserving (free)
    # Put HW on lanes for the attention math; tiny glue op on a small tensor.
    a2 = jnp.swapaxes(amap, -1, -2).reshape(B, Ns, K * L, HW)

    tr = _pick_row_tile(n_rows, lane_w)
    grid = (B, Ns, n_rows // tr)

    kernel = functools.partial(_meta_faster_kernel, k_shot=K, map_l=L, rep=rep)

    feat_spec_q = pl.BlockSpec((1, 1, tr, lane_w), lambda b, n, c: (b, n, c, 0))
    feat_spec_s = pl.BlockSpec((1, 1, tr, lane_w), lambda b, n, c: (n, b, c, 0))
    amap_spec = pl.BlockSpec((1, 1, K * L, HW), lambda b, n, c: (b, n, 0, 0))

    q_out, s_out = pl.pallas_call(
        kernel,
        out_shape=(
            jax.ShapeDtypeStruct((B, Ns, n_rows, lane_w), query_feat.dtype),
            jax.ShapeDtypeStruct((Ns, B, n_rows, lane_w), support_feat.dtype),
        ),
        grid_spec=pltpu.PrefetchScalarGridSpec(
            num_scalar_prefetch=0,
            grid=grid,
            in_specs=[amap_spec, feat_spec_q, feat_spec_s],
            out_specs=[feat_spec_q, feat_spec_s],
            scratch_shapes=[pltpu.VMEM((1, lane_w), jnp.float32)],
        ),
        compiler_params=pltpu.CompilerParams(
            dimension_semantics=("parallel", "parallel", "arbitrary")),
    )(a2, q2, s2)

    return (q_out.reshape(B, Ns, C, H, W), s_out.reshape(Ns, B, C, H, W))


def meta_faster_forward(features, k_shot):
    """Pallas equivalent of META_FASTER.forward (align_first=False naming)."""
    query_features = features["query_features"]
    support_features = features["support_features"]
    attention_maps = features["attention_map"]
    query_out, support_out = [], []
    for qf, sf, am in zip(query_features, support_features, attention_maps):
        qo, so = meta_faster_level(qf, sf, am, k_shot)
        query_out.append(qo)
        support_out.append(so)
    out = dict(features)
    out.update({"query_p1": query_out, "support_p1": support_out})
    return out


def _reference_level(query_feat, support_feat, attention_map, k_shot):
    """Plain-JAX mirror of the PyTorch forward for one level."""
    B, Ns, C, H, W = query_feat.shape
    s = attention_map.reshape(B, Ns, k_shot, H * W, -1).sum(axis=-1)
    s = jax.nn.softmax(s, axis=-1)
    att = s.reshape(B, Ns, k_shot, 1, H, W).mean(axis=2)      # (B, Ns, 1, H, W)
    q_out = query_feat * att
    s_out = support_feat * jnp.transpose(att, (1, 0, 2, 3, 4))
    return q_out, s_out


if __name__ == "__main__":
    key = jax.random.PRNGKey(0)
    B, Ns, C, K = 2, 3, 32, 2                  # batch, N_support (ways), channels, K_SHOT
    spatial = [16, 16, 8, 8, 8]                # 5 FPN levels (small), 2 unique shapes
    L = 24                                     # trailing dim of raw attention maps

    n_lvl = len(spatial)
    keys = jax.random.split(key, 3 * n_lvl)
    query_features, support_features, attention_maps = [], [], []
    for i, sdim in enumerate(spatial):
        qk, sk_, ak = keys[3 * i], keys[3 * i + 1], keys[3 * i + 2]
        query_features.append(
            jax.random.normal(qk, (B, Ns, C, sdim, sdim), dtype=jnp.float32))
        support_features.append(
            jax.random.normal(sk_, (Ns, B, C, sdim, sdim), dtype=jnp.float32))
        attention_maps.append(
            jax.random.normal(ak, (B, Ns, K, sdim * sdim, L), dtype=jnp.float32))

    features = {
        "query_features": query_features,
        "support_features": support_features,
        "attention_map": attention_maps,
        "support_targets": None,
    }

    out = meta_faster_forward(features, k_shot=K)
    for arrs in (out["query_p1"], out["support_p1"]):
        for a in arrs:
            jax.block_until_ready(a)

    for i in range(n_lvl):
        q_ref, s_ref = _reference_level(
            query_features[i], support_features[i], attention_maps[i], K)
        assert jnp.allclose(out["query_p1"][i], q_ref, atol=1e-5, rtol=1e-5), \
            f"query level {i} mismatch"
        assert jnp.allclose(out["support_p1"][i], s_ref, atol=1e-5, rtol=1e-5), \
            f"support level {i} mismatch"

    print("KERNEL_OK")
</pallas_src>

<mosaic_0001>
module attributes {stable_mosaic.version = 11 : i64} {
  func.func @_meta_faster_kernel(%arg0: i32, %arg1: i32, %arg2: i32, %arg3: memref<1x1x48x256xf32, #tpu.memory_space<vmem>>, %arg4: memref<1x1x32x256xf32, #tpu.memory_space<vmem>>, %arg5: memref<1x1x32x256xf32, #tpu.memory_space<vmem>>, %arg6: memref<1x1x32x256xf32, #tpu.memory_space<vmem>>, %arg7: memref<1x1x32x256xf32, #tpu.memory_space<vmem>>, %arg8: memref<1x256xf32, #tpu.memory_space<vmem>>) attributes {dimension_semantics = [#tpu.dimension_semantics<parallel>, #tpu.dimension_semantics<parallel>, #tpu.dimension_semantics<arbitrary>], iteration_bounds = array<i64: 2, 3, 1>, scalar_prefetch = 0 : i64, scratch_operands = 1 : i64, tpu.core_type = #tpu.core_type<tc>, window_params = [{transform_indices = @transform_0, window_bounds = array<i64: 1, 1, 48, 256>}, {transform_indices = @transform_1, window_bounds = array<i64: 1, 1, 32, 256>}, {transform_indices = @transform_2, window_bounds = array<i64: 1, 1, 32, 256>}, {transform_indices = @transform_3, window_bounds = array<i64: 1, 1, 32, 256>}, {transform_indices = @transform_4, window_bounds = array<i64: 1, 1, 32, 256>}]} {
    %c0_i32 = arith.constant 0 : i32
    %0 = arith.cmpi eq, %arg2, %c0_i32 : i32
    %1 = arith.extui %0 : i1 to i32
    %c0_i32_0 = arith.constant 0 : i32
    %2 = arith.cmpi ne, %1, %c0_i32_0 : i32
    scf.if %2 {
      %c0_18 = arith.constant 0 : index
      %c0_19 = arith.constant 0 : index
      %c0_20 = arith.constant 0 : index
      %c0_21 = arith.constant 0 : index
      %18 = vector.load %arg3[%c0_18, %c0_19, %c0_20, %c0_21] : memref<1x1x48x256xf32, #tpu.memory_space<vmem>>, vector<1x1x24x256xf32>
      %19 = vector.shape_cast %18 : vector<1x1x24x256xf32> to vector<24x256xf32>
      %cst = arith.constant dense<0.000000e+00> : vector<256xf32>
      %20 = vector.multi_reduction <add>, %19, %cst [0] : vector<24x256xf32> to vector<256xf32>
      %21 = vector.shape_cast %20 : vector<256xf32> to vector<1x256xf32>
      %cst_22 = arith.constant dense<0xFF800000> : vector<1xf32>
      %22 = vector.multi_reduction <maximumf>, %21, %cst_22 [1] : vector<1x256xf32> to vector<1xf32>
      %23 = vector.shape_cast %22 : vector<1xf32> to vector<1x1xf32>
      %24 = vector.broadcast %23 : vector<1x1xf32> to vector<1x256xf32>
      %25 = arith.subf %21, %24 : vector<1x256xf32>
      %26 = math.exp %25 : vector<1x256xf32>
      %cst_23 = arith.constant dense<0.000000e+00> : vector<1xf32>
      %27 = vector.multi_reduction <add>, %26, %cst_23 [1] : vector<1x256xf32> to vector<1xf32>
      %28 = vector.shape_cast %27 : vector<1xf32> to vector<1x1xf32>
      %29 = vector.broadcast %28 : vector<1x1xf32> to vector<1x256xf32>
      %30 = arith.divf %26, %29 : vector<1x256xf32>
      %c0_24 = arith.constant 0 : index
      %c0_25 = arith.constant 0 : index
      %c24 = arith.constant 24 : index
      %c0_26 = arith.constant 0 : index
      %31 = vector.load %arg3[%c0_24, %c0_25, %c24, %c0_26] : memref<1x1x48x256xf32, #tpu.memory_space<vmem>>, vector<1x1x24x256xf32>
      %32 = vector.shape_cast %31 : vector<1x1x24x256xf32> to vector<24x256xf32>
      %cst_27 = arith.constant dense<0.000000e+00> : vector<256xf32>
      %33 = vector.multi_reduction <add>, %32, %cst_27 [0] : vector<24x256xf32> to vector<256xf32>
      %34 = vector.shape_cast %33 : vector<256xf32> to vector<1x256xf32>
      %cst_28 = arith.constant dense<0xFF800000> : vector<1xf32>
      %35 = vector.multi_reduction <maximumf>, %34, %cst_28 [1] : vector<1x256xf32> to vector<1xf32>
      %36 = vector.shape_cast %35 : vector<1xf32> to vector<1x1xf32>
      %37 = vector.broadcast %36 : vector<1x1xf32> to vector<1x256xf32>
      %38 = arith.subf %34, %37 : vector<1x256xf32>
      %39 = math.exp %38 : vector<1x256xf32>
      %cst_29 = arith.constant dense<0.000000e+00> : vector<1xf32>
      %40 = vector.multi_reduction <add>, %39, %cst_29 [1] : vector<1x256xf32> to vector<1xf32>
      %41 = vector.shape_cast %40 : vector<1xf32> to vector<1x1xf32>
      %42 = vector.broadcast %41 : vector<1x1xf32> to vector<1x256xf32>
      %43 = arith.divf %39, %42 : vector<1x256xf32>
      %44 = arith.addf %30, %43 : vector<1x256xf32>
      %cst_30 = arith.constant 5.000000e-01 : f32
      %45 = vector.broadcast %cst_30 : f32 to vector<1x256xf32>
      %46 = arith.mulf %44, %45 : vector<1x256xf32>
      %c0_31 = arith.constant 0 : index
      %c0_32 = arith.constant 0 : index
      %47 = vector.load %arg8[%c0_31, %c0_32] : memref<1x256xf32, #tpu.memory_space<vmem>>, vector<1x256xf32>
      tpu.vector_store %arg8[%c0_31, %c0_32], %46 {strides = array<i32>} : memref<1x256xf32, #tpu.memory_space<vmem>>, vector<1x256xf32>,
    } else {
    }
    %c0 = arith.constant 0 : index
    %c0_1 = arith.constant 0 : index
    %3 = vector.load %arg8[%c0, %c0_1] : memref<1x256xf32, #tpu.memory_space<vmem>>, vector<1x256xf32>
    %c0_2 = arith.constant 0 : index
    %c0_3 = arith.constant 0 : index
    %c0_4 = arith.constant 0 : index
    %c0_5 = arith.constant 0 : index
    %4 = vector.load %arg4[%c0_2, %c0_3, %c0_4, %c0_5] : memref<1x1x32x256xf32, #tpu.memory_space<vmem>>, vector<1x1x32x256xf32>
    %5 = vector.shape_cast %4 : vector<1x1x32x256xf32> to vector<32x256xf32>
    %6 = vector.broadcast %3 : vector<1x256xf32> to vector<32x256xf32>
    %7 = arith.mulf %5, %6 : vector<32x256xf32>
    %c0_6 = arith.constant 0 : index
    %c0_7 = arith.constant 0 : index
    %c0_8 = arith.constant 0 : index
    %c0_9 = arith.constant 0 : index
    %8 = vector.load %arg6[%c0_6, %c0_7, %c0_8, %c0_9] : memref<1x1x32x256xf32, #tpu.memory_space<vmem>>, vector<1x1x32x256xf32>
    %9 = vector.shape_cast %8 : vector<1x1x32x256xf32> to vector<32x256xf32>
    %10 = vector.shape_cast %7 : vector<32x256xf32> to vector<1x1x32x256xf32>
    tpu.vector_store %arg6[%c0_6, %c0_7, %c0_8, %c0_9], %10 {strides = array<i32>} : memref<1x1x32x256xf32, #tpu.memory_space<vmem>>, vector<1x1x32x256xf32>,
    %c0_10 = arith.constant 0 : index
    %c0_11 = arith.constant 0 : index
    %c0_12 = arith.constant 0 : index
    %c0_13 = arith.constant 0 : index
    %11 = vector.load %arg5[%c0_10, %c0_11, %c0_12, %c0_13] : memref<1x1x32x256xf32, #tpu.memory_space<vmem>>, vector<1x1x32x256xf32>
    %12 = vector.shape_cast %11 : vector<1x1x32x256xf32> to vector<32x256xf32>
    %13 = vector.broadcast %3 : vector<1x256xf32> to vector<32x256xf32>
    %14 = arith.mulf %12, %13 : vector<32x256xf32>
    %c0_14 = arith.constant 0 : index
    %c0_15 = arith.constant 0 : index
    %c0_16 = arith.constant 0 : index
    %c0_17 = arith.constant 0 : index
    %15 = vector.load %arg7[%c0_14, %c0_15, %c0_16, %c0_17] : memref<1x1x32x256xf32, #tpu.memory_space<vmem>>, vector<1x1x32x256xf32>
    %16 = vector.shape_cast %15 : vector<1x1x32x256xf32> to vector<32x256xf32>
    %17 = vector.shape_cast %14 : vector<32x256xf32> to vector<1x1x32x256xf32>
    tpu.vector_store %arg7[%c0_14, %c0_15, %c0_16, %c0_17], %17 {strides = array<i32>} : memref<1x1x32x256xf32, #tpu.memory_space<vmem>>, vector<1x1x32x256xf32>,
    return
  }
  func.func @transform_0(%arg0: i32, %arg1: i32, %arg2: i32) -> (i32, i32, i32, i32) {
    %c0_i32 = arith.constant 0 : i32
    %c0_i32_0 = arith.constant 0 : i32
    %c0_i32_1 = arith.constant 0 : i32
    return %arg0, %arg1, %c0_i32, %c0_i32_0 : i32, i32, i32, i32
  }
  func.func @transform_1(%arg0: i32, %arg1: i32, %arg2: i32) -> (i32, i32, i32, i32) {
    %c0_i32 = arith.constant 0 : i32
    %c0_i32_0 = arith.constant 0 : i32
    return %arg0, %arg1, %arg2, %c0_i32 : i32, i32, i32, i32
  }
  func.func @transform_2(%arg0: i32, %arg1: i32, %arg2: i32) -> (i32, i32, i32, i32) {
    %c0_i32 = arith.constant 0 : i32
    %c0_i32_0 = arith.constant 0 : i32
    return %arg1, %arg0, %arg2, %c0_i32 : i32, i32, i32, i32
  }
  func.func @transform_3(%arg0: i32, %arg1: i32, %arg2: i32) -> (i32, i32, i32, i32) {
    %c0_i32 = arith.constant 0 : i32
    %c0_i32_0 = arith.constant 0 : i32
    return %arg0, %arg1, %arg2, %c0_i32 : i32, i32, i32, i32
  }
  func.func @transform_4(%arg0: i32, %arg1: i32, %arg2: i32) -> (i32, i32, i32, i32) {
    %c0_i32 = arith.constant 0 : i32
    %c0_i32_0 = arith.constant 0 : i32
    return %arg1, %arg0, %arg2, %c0_i32 : i32, i32, i32, i32
  }
}

</mosaic_0001>

<bundles_post_ra>
// kernel: meta_faster_level.1
= control target key start
LH: loop header
LB: loop body
LE: loop exit
PB: predicated region body
PF: predicated region fallthrough
CT: control target
= control target key end

     0   :  { %s945_s15 = smov 0   ;;  %s947_s16 = smov 0   ;;  %s1011_s0 = inlined_call_operand.vmem [shape: f32[2,3,48,256], index: 0, kind: input, shape index: {}]   ;;  %s1012_s1 = inlined_call_operand.vmem [shape: f32[2,3,32,256], index: 1, kind: input, shape index: {}]   ;;  %s1013_s2 = inlined_call_operand.vmem [shape: f32[3,2,32,256], index: 2, kind: input, shape index: {}]   ;;  %s1014_s3 = inlined_call_operand.vmem [shape: f32[2,3,32,256], index: 3, kind: output, shape index: {0}]   ;;  %s1015_s4 = inlined_call_operand.vmem [shape: f32[3,2,32,256], index: 4, kind: output, shape index: {1}]  }
   0x1   :  { %s949_s17 = smov 0   ;;  %s951_s18 = smov 0  }
   0x2   :  { %s953_s19 = smov 0  }
   0x3 LB: > { %s30_s20 = sadd.s32 1, %s909_s17  ;;  %s34_s21 = sadd.s32 1, %s913_s18  ;;  %s917_s19 = sphi %s953_s19, %s15_s19   ;;  %s913_s18 = sphi %s951_s18, %s1019_s18   ;;  %s909_s17 = sphi %s949_s17, %s1018_s17   ;;  %s905_s16 = sphi %s947_s16, %s1017_s16   ;;  %s901_s15 = sphi %s945_s15, %s1016_s15  }
   0x4   : > { %p32_p0 = scmp.ge.s32.totalorder %s30_s20, 3  ;;  %p809_p1 = scmp.ge.s32.totalorder %s917_s19, 1 }
   0x5   : > { %p246_p2 = scmp.lt.s32.totalorder %s917_s19, 7 }
   0x6   : > { %s1021_s20 = smov (%p32_p0, %s30_s20), 0  ;;  %s1023_s21 = smov (!%p32_p0, %s34_s21), %s913_s18 }
   0x7   : > { %p247_p3 = pnand %p809_p1, %p246_p2  ;;  %p36_p4 = scmp.ge.s32.totalorder %s1023_s21, 2 }
   0x8   : > { %p327_p5 = scmp.lt.s32.totalorder (!%p247_p3), %s905_s16, 1  ;;  %p329_p6 = scmp.lt.s32.totalorder (!%p247_p3), %s901_s15, 2 }
   0x9   : > { %s1025_s21 = smov (%p36_p4, %s1023_s21), 0  ;;  %250 = sbr.rel (%p247_p3) target bundleno = 392 (0x188), region = 32 }
  0x10   : > { %s1027_s16 = smov (!%p327_p5, %s905_s16), 1  ;;  %s1029_s15 = smov (!%p329_p6, %s901_s15), 2 }
  0x11   : > { %s824_s22 = smul.u32 36, %s1027_s16  ;;  %s813_s23 = sshll.u32 %s1027_s16, 3 }
  0x12   : > { %s823_s24 = smul.u32 12, %s1029_s15  ;;  %s811_s25 = sshll.u32 %s1029_s15, 3 }
  0x13   : > { %s825_s26 = smul.u32 24, %s1027_s16  ;;  %s814_s27 = sshll.u32 %s1029_s15, 4 }
  0x14   : > { %s333_s28 = sadd.s32 %s824_s22, %s823_s24  ;;  %s975_s29 = sadd.s32 %s814_s27, %s813_s23 }
  0x15   : > { %s810_s30 = sshll.u32 %s333_s28, 3  ;;  %s977_s5 = sadd.s32 %s825_s26, %s811_s25 }
  0x16   : > { %s335_s8 = scalar_lea.vmem %s1011_s0, %s810_s30  ;;  %s812_s9 = sshll.u32 %s977_s5, 3 }
  0x17   : > { %v400_v0 = vld [vmem:[%s335_s8] sm:$0xff]  ;;  %v401_v1 = vld [vmem:[%s335_s8 + $0x8] sm:$0xff]  ;;  %v402_v2 = vld [vmem:[%s335_s8 + $0x10] sm:$0xff]  ;;  %s349_s12 = scalar_lea.vmem %s1012_s1, %s812_s9  ;;  %s815_s13 = sshll.u32 %s975_s29, 3 }
  0x18   : > { %v403_v3 = vld [vmem:[%s335_s8 + $0x18] sm:$0xff]  ;;  %v404_v4 = vld [vmem:[%s335_s8 + $0x20] sm:$0xff]  ;;  %v405_v5 = vld [vmem:[%s335_s8 + $0x28] sm:$0xff]  ;;  %v406_v6 = vadd.f32 %v402_v2, %v400_v0  ;;  %v919_v0 = vmov 1966171168   ;;  %v484_v2 = vlaneseq  ;;  %s364_s16 = scalar_lea.vmem %s1013_s2, %s815_s13  ;;  %s379_s24 = scalar_lea.vmem %s1014_s3, %s812_s9 }
  0x19   : > { %v414_v7 = vadd.f32 %v403_v3, %v401_v1  ;;  %v437_v8 = vld [vmem:[%s335_s8 + $0x30] sm:$0xff]  ;;  %v438_v9 = vld [vmem:[%s335_s8 + $0x38] sm:$0xff]  ;;  %v439_v10 = vld [vmem:[%s335_s8 + $0x40] sm:$0xff]  ;;  %v482_v1 = vunpack.c.l.s4 %v919_v0  ;;  %s394_s27 = scalar_lea.vmem %s1015_s4, %s815_s13 }
  0x1a   : > { %v407_v11 = vadd.f32 %v406_v6, %v404_v4  ;;  %v440_v12 = vld [vmem:[%s335_s8 + $0x48] sm:$0xff]  ;;  %v441_v13 = vld [vmem:[%s335_s8 + $0x50] sm:$0xff]  ;;  %v442_v14 = vld [vmem:[%s335_s8 + $0x58] sm:$0xff]  ;;  %v443_v15 = vadd.f32 %v439_v10, %v437_v8  ;;  %v485_v6 = vshrl.u32 %v484_v2, 7  ;;  %vm498_vm0 = vcmp.lt.s32.totalorder %v484_v2, 256 }
  0x1b   : > { %v415_v16 = vadd.f32 %v414_v7, %v405_v5  ;;  %v451_v17 = vadd.f32 %v440_v12, %v438_v9  ;;  %v483_v5 = vunpack.c.0.s8 %v482_v1 }
  0x1c   : > { %v408_v18 = vrot.slane %v407_v11, 4  ;;  %v444_v19 = vadd.f32 %v443_v15, %v441_v13 }
  0x1d   : > { %v416_v20 = vrot.slane %v415_v16, 4  ;;  %v452_v21 = vadd.f32 %v451_v17, %v442_v14  ;;  %v486_v13 = vsub.s32 %v483_v5, %v485_v6 }
  0x1e   : > { %v409_v22 = vadd.f32 %v408_v18, %v407_v11  ;;  %v445_v23 = vrot.slane %v444_v19, 4 }
  0x1f   : > { %v417_v24 = vadd.f32 %v416_v20, %v415_v16  ;;  %v453_v25 = vrot.slane %v452_v21, 4  ;;  %v517_v20 = vsub.s32 1, %v485_v6 }
  0x20   : > { %v410_v26 = vrot.slane %v409_v22, 2  ;;  %v446_v27 = vadd.f32 %v445_v23, %v444_v19  ;;  %v513_v19 = vsub.s32 0, %v485_v6  ;;  %v504_v23 = vld [vmem:[%s349_s12 + $0x10] sm:$0xff] }
  0x21   : > { %v418_v28 = vrot.slane %v417_v24, 2  ;;  %v454_v29 = vadd.f32 %v453_v25, %v452_v21  ;;  %v502_v21 = vld [vmem:[%s349_s12] sm:$0xff] }
  0x22   : > { %v411_v30 = vadd.f32 %v410_v26, %v409_v22  ;;  %v447_v31 = vrot.slane %v446_v27, 2  ;;  %v503_v22 = vld [vmem:[%s349_s12 + $0x8] sm:$0xff]  ;;  %v506_v25 = vld [vmem:[%s349_s12 + $0x20] sm:$0xff] }
  0x23   : > { %v419_v32 = vadd.f32 %v418_v28, %v417_v24  ;;  %v455_v33 = vrot.slane %v454_v29, 2  ;;  %v505_v24 = vld [vmem:[%s349_s12 + $0x18] sm:$0xff]  ;;  %v507_v26 = vld [vmem:[%s349_s12 + $0x28] sm:$0xff] }
  0x24   : > { %v412_v34 = vrot.slane %v411_v30, 1  ;;  %v448_v35 = vadd.f32 %v447_v31, %v446_v27  ;;  %v508_v27 = vld [vmem:[%s349_s12 + $0x30] sm:$0xff]  ;;  %v538_v31 = vld [vmem:[%s364_s16 + $0x8] sm:$0xff] }
  0x25   : > { %v420_v36 = vrot.slane %v419_v32, 1  ;;  %v456_v37 = vadd.f32 %v455_v33, %v454_v29  ;;  %v509_v29 = vld [vmem:[%s349_s12 + $0x38] sm:$0xff] }
  0x26   : > { %v413_v38 = vadd.f32 %v412_v34, %v411_v30  ;;  %v449_v39 = vrot.slane %v448_v35, 1  ;;  %v537_v30 = vld [vmem:[%s364_s16] sm:$0xff]  ;;  %v539_v34 = vld [vmem:[%s364_s16 + $0x10] sm:$0xff] }
  0x27   : > { %v421_v40 = vadd.f32 %v420_v36, %v419_v32  ;;  %v457_v41 = vrot.slane %v456_v37, 1  ;;  %v541_v36 = vld [vmem:[%s364_s16 + $0x20] sm:$0xff] }
  0x28   : > { %v450_v42 = vadd.f32 %v449_v39, %v448_v35  ;;  %v540_v35 = vld [vmem:[%s364_s16 + $0x18] sm:$0xff] }
  0x29   : > { %v422_v43 = vmax.f32 %v413_v38, %v421_v40  ;;  %v458_v44 = vadd.f32 %v457_v41, %v456_v37  ;;  %v542_v37 = vld [vmem:[%s364_s16 + $0x28] sm:$0xff]  ;;  %v544_v39 = vld [vmem:[%s364_s16 + $0x38] sm:$0xff] }
  0x2b   : > { %423 = vmax.xlane.f32.xlu0 %v422_v43  ;;  %v459_v45 = vmax.f32 %v450_v42, %v458_v44 }
  0x2f   : > { %460 = vmax.xlane.f32.xlu0 %v459_v45 }
  0xb8   : > { %v424_v46 = vpop.xlane.xlu0 %423 }
  0xb9   : > { %v425_v47 = vsub.f32 %v413_v38, %v424_v46  ;;  %v426_v48 = vsub.f32 %v421_v40, %v424_v46  ;;  %v543_v38 = vld [vmem:[%s364_s16 + $0x30] sm:$0xff] }
  0xbb   : > { %v427_v49 = vmul.f32 1.442695, %v425_v47  ;;  %v429_v50 = vmul.f32 1.442695, %v426_v48 }
  0xbc   : > { %v461_v51 = vpop.xlane.xlu0 %460 }
  0xbd   : > { %867 = vpow2.f32 %v427_v49  ;;  %v462_v52 = vsub.f32 %v450_v42, %v461_v51  ;;  %v463_v53 = vsub.f32 %v458_v44, %v461_v51 }
  0xbe   : > { %869 = vpow2.f32 %v429_v50 }
  0xbf   : > { %v464_v54 = vmul.f32 1.442695, %v462_v52  ;;  %v466_v55 = vmul.f32 1.442695, %v463_v53 }
  0xc1   : > { %871 = vpow2.f32 %v464_v54 }
  0xc2   : > { %873 = vpow2.f32 %v466_v55 }
  0xc7   : > { %v868_v56 = vpop.eup %867 }
  0xc8   : > { %v870_v57 = vpop.eup %869 }
  0xc9   : > { %v431_v58 = vadd.f32 %v870_v57, %v868_v56 }
  0xcb   : > { %v872_v59 = vpop.eup %871  ;;  %432 = vadd.xlane.f32.xlu1 %v431_v58 }
  0xcc   : > { %v874_v60 = vpop.eup %873 }
  0xcd   : > { %v468_v61 = vadd.f32 %v874_v60, %v872_v59 }
  0xcf   : > { %469 = vadd.xlane.f32.xlu1 %v468_v61 }
 0x158   : > { %v433_v62 = vpop.xlane.xlu1 %432 }
 0x159   : > { %875 = vrcp.f32 %v433_v62 }
 0x15c   : > { %v470_v63 = vpop.xlane.xlu1 %469 }
 0x15d   : > { %877 = vrcp.f32 %v470_v63 }
 0x163   : > { %v876_v3 = vpop.eup %875 }
 0x164   : > { %v435_v7 = vmul.f32 %v876_v3, %v868_v56  ;;  %v436_v8 = vmul.f32 %v876_v3, %v870_v57 }
 0x167   : > { %v878_v4 = vpop.eup %877 }
 0x168   : > { %v472_v9 = vmul.f32 %v878_v4, %v872_v59  ;;  %v473_v10 = vmul.f32 %v878_v4, %v874_v60 }
 0x16a   : > { %v474_v11 = vadd.f32 %v472_v9, %v435_v7  ;;  %v475_v12 = vadd.f32 %v473_v10, %v436_v8 }
 0x16c   : > { %v476_v14 = vmul.f32 0.5, %v474_v11  ;;  %v477_v15 = vmul.f32 0.5, %v475_v12 }
 0x16e   : > { %v480_v16 = vcombine.low %v476_v14, %v477_v15 }
 0x170   : > { %v487_v17 = vrot.slane %v480_v16, %v486_v13 }
 0x172   : > { %v494_v18 = vrot.slane %v487_v17, %v486_v13 }
 0x174   : > { %500 = vst.msk [vmem:[#allocation2] sm:$0x3] %vm498_vm0, %v494_v18 }
 0x17b   : > { %v501_v28 = vld [vmem:[#allocation2] sm:$0x3] }
 0x17c   : > { %v514_v32 = vrot.slane %v501_v28, %v513_v19  ;;  %v518_v33 = vrot.slane %v501_v28, %v517_v20 }
 0x17e   : > { %v521_v40 = vmul.f32 %v514_v32, %v502_v21  ;;  %v522_v41 = vmul.f32 %v518_v33, %v503_v22  ;;  %v523_v42 = vmul.f32 %v514_v32, %v504_v23  ;;  %v524_v43 = vmul.f32 %v518_v33, %v505_v24 }
 0x17f   : > { %v525_v44 = vmul.f32 %v514_v32, %v506_v25  ;;  %v526_v45 = vmul.f32 %v518_v33, %v507_v26  ;;  %v527_v46 = vmul.f32 %v514_v32, %v508_v27  ;;  %v528_v47 = vmul.f32 %v518_v33, %v509_v29 }
 0x180   : > { %529 = vst [vmem:[%s379_s24] sm:$0xff] %v521_v40  ;;  %530 = vst [vmem:[%s379_s24 + $0x8] sm:$0xff] %v522_v41  ;;  %v545_v48 = vmul.f32 %v537_v30, %v514_v32  ;;  %v546_v49 = vmul.f32 %v538_v31, %v518_v33  ;;  %v547_v50 = vmul.f32 %v539_v34, %v514_v32 }
 0x181   : > { %531 = vst [vmem:[%s379_s24 + $0x10] sm:$0xff] %v523_v42  ;;  %532 = vst [vmem:[%s379_s24 + $0x18] sm:$0xff] %v524_v43  ;;  %v548_v51 = vmul.f32 %v540_v35, %v518_v33  ;;  %v549_v52 = vmul.f32 %v541_v36, %v514_v32  ;;  %v550_v53 = vmul.f32 %v542_v37, %v518_v33 }
 0x182   : > { %533 = vst [vmem:[%s379_s24 + $0x20] sm:$0xff] %v525_v44  ;;  %534 = vst [vmem:[%s379_s24 + $0x28] sm:$0xff] %v526_v45  ;;  %v551_v54 = vmul.f32 %v543_v38, %v514_v32  ;;  %v552_v55 = vmul.f32 %v544_v39, %v518_v33 }
 0x183   : > { %535 = vst [vmem:[%s379_s24 + $0x30] sm:$0xff] %v527_v46  ;;  %536 = vst [vmem:[%s379_s24 + $0x38] sm:$0xff] %v528_v47 }
 0x184   : > { %553 = vst [vmem:[%s394_s27] sm:$0xff] %v545_v48  ;;  %554 = vst [vmem:[%s394_s27 + $0x8] sm:$0xff] %v546_v49 }
 0x185   : > { %555 = vst [vmem:[%s394_s27 + $0x10] sm:$0xff] %v547_v50  ;;  %556 = vst [vmem:[%s394_s27 + $0x18] sm:$0xff] %v548_v51 }
 0x186   : > { %557 = vst [vmem:[%s394_s27 + $0x20] sm:$0xff] %v549_v52  ;;  %558 = vst [vmem:[%s394_s27 + $0x28] sm:$0xff] %v550_v53 }
 0x187   : > { %559 = vst [vmem:[%s394_s27 + $0x30] sm:$0xff] %v551_v54  ;;  %560 = vst [vmem:[%s394_s27 + $0x38] sm:$0xff] %v552_v55 }
 0x188 PF: > { %s15_s19 = sadd.s32 1, %s917_s19   ;;  %s1016_s15 = smov %s909_s17 }
 0x189   : > { %p12_p7 = scmp.ge.s32.totalorder %s15_s19, 8   ;;  %s1017_s16 = smov %s913_s18 }
 0x18a   : > { %s1018_s17 = smov %s1021_s20  ;;  %s1019_s18 = smov %s1025_s21 }
 0x18b   :  { %14 = sbr.rel (!%p12_p7) target bundleno = 3 (0x3), region = 84 }

</bundles_post_ra>
